<compile_context>
chip_gen: v7x
topology: tpu7x:2x2x1
jax: 0.10.0
libtpu: 0.0.40
codegen_flags: <defaults>
</compile_context>

<pallas_src>
import jax
import jax.numpy as jnp
from jax import lax
from jax.experimental import pallas as pl
from jax.experimental.pallas import tpu as pltpu


_DN_T = (((0,), (0,)), ((), ()))          # dot_general dims for a^T @ b
_VMEM_LIMIT = 32 * 1024 * 1024            # explicit scoped-VMEM cap (fits all chips)
_ROW_TILE_BUDGET = 16 * 1024 * 1024       # budget for 2x-buffered row-tiled blocks


def _round_up(x, m):
    return ((x + m - 1) // m) * m


def _pad2d(a, rows, cols):
    r, c = a.shape
    return jnp.pad(a, ((0, rows - r), (0, cols - c)))


def _plan_rows(n, row_bytes, max_tile=512):
    """Pick (tile_n, n_par, n_red, n_pad) for the sample axis.

    tile_n is a multiple of 8 sized so double-buffered row tiles fit the VMEM
    budget (v7x only has 64 MiB).  N is padded up to tile_n * n_par * n_red and
    the tail rows are masked inside the kernel — no single-giant-block
    fallback.  n_par = 2 feeds both v7x TensorCores when there are >= 2 tiles.
    """
    by_budget = max(8, (_ROW_TILE_BUDGET // (2 * max(row_bytes, 1))) // 8 * 8)
    tn = int(min(max_tile, by_budget, _round_up(n, 8)))
    tiles = -(-n // tn)                      # cdiv
    n_par = 2 if tiles >= 2 else 1
    if tiles % n_par:
        tiles += 1                           # make the parallel axis divide
    return tn, n_par, tiles // n_par, tiles * tn


# --------------------------------------------------------------------------
# Kernel 1: fused fc projection + LDA/PCA sufficient statistics
#   grid = (n_par, n_red): parallel split across TensorCores, reduction over
#   row tiles with VMEM accumulators (pl.when init / finalize).
#   outputs: feat [N_pad, D_pad], per-core partial G [n_par, D_pad, D_pad],
#            per-core partial class sums S [n_par, K_pad, D_pad]
# --------------------------------------------------------------------------
def _stats_kernel(pooled_ref, w_ref, b_ref, oh_ref, mask_ref,
                  feat_ref, g_ref, s_ref, g_acc, s_acc):
    r = pl.program_id(1)

    @pl.when(r == 0)
    def _():
        g_acc[...] = jnp.zeros_like(g_acc)
        s_acc[...] = jnp.zeros_like(s_acc)

    # synthetic backbone fc on the pre-pooled activations (tiny contraction;
    # kept f32 — the MXU cost here is negligible and statistics want f32).
    feat = (jnp.dot(pooled_ref[...], w_ref[...],
                    preferred_element_type=jnp.float32) + b_ref[...])
    feat_ref[...] = feat

    fm = feat * mask_ref[...]                          # zero padded tail rows
    g_acc[...] += lax.dot_general(fm, fm, _DN_T,       # feat^T @ feat
                                  preferred_element_type=jnp.float32)
    s_acc[...] += lax.dot_general(oh_ref[...], fm, _DN_T,   # onehot^T @ feat
                                  preferred_element_type=jnp.float32)

    @pl.when(r == pl.num_programs(1) - 1)
    def _():
        g_ref[...] = g_acc[...]
        s_ref[...] = s_acc[...]


def backbone_and_stats(pooled, w_fc, b_fc, onehot, mask, tn, n_par, n_red):
    n_pad, c_pad = pooled.shape
    d_pad = w_fc.shape[1]
    k_pad = onehot.shape[1]

    row_map = lambda p, r: (p * n_red + r, 0)
    const_map = lambda p, r: (0, 0)
    part_map = lambda p, r: (p, 0, 0)

    flops = 2 * n_pad * d_pad * (c_pad + d_pad + k_pad)
    bytes_accessed = 4 * (n_pad * (c_pad + k_pad + 1 + d_pad)
                          + c_pad * d_pad + d_pad
                          + n_par * (d_pad * d_pad + k_pad * d_pad))

    feat, g_part, s_part = pl.pallas_call(
        _stats_kernel,
        out_shape=(jax.ShapeDtypeStruct((n_pad, d_pad), jnp.float32),
                   jax.ShapeDtypeStruct((n_par, d_pad, d_pad), jnp.float32),
                   jax.ShapeDtypeStruct((n_par, k_pad, d_pad), jnp.float32)),
        grid=(n_par, n_red),
        in_specs=[pl.BlockSpec((tn, c_pad), row_map),
                  pl.BlockSpec((c_pad, d_pad), const_map),
                  pl.BlockSpec((1, d_pad), const_map),
                  pl.BlockSpec((tn, k_pad), row_map),
                  pl.BlockSpec((tn, 1), row_map)],
        out_specs=(pl.BlockSpec((tn, d_pad), row_map),
                   pl.BlockSpec((None, d_pad, d_pad), part_map),
                   pl.BlockSpec((None, k_pad, d_pad), part_map)),
        scratch_shapes=[pltpu.VMEM((d_pad, d_pad), jnp.float32),
                        pltpu.VMEM((k_pad, d_pad), jnp.float32)],
        compiler_params=pltpu.CompilerParams(
            dimension_semantics=("parallel", "arbitrary"),
            vmem_limit_bytes=_VMEM_LIMIT),
        cost_estimate=pl.CostEstimate(flops=flops, transcendentals=0,
                                      bytes_accessed=bytes_accessed),
    )(pooled, w_fc, b_fc, onehot, mask)
    return feat, g_part, s_part


# --------------------------------------------------------------------------
# Kernel 2: LDA + PCA transforms, two separate lane-dense outputs.
#   x_lda = feat @ comp_lda ; x_pca = feat @ comp_pca - omean @ comp_pca
# --------------------------------------------------------------------------
def _transform_kernel(feat_ref, wl_ref, wp_ref, bp_ref, lda_ref, pca_ref):
    f = feat_ref[...]
    lda_ref[...] = jnp.dot(f, wl_ref[...], preferred_element_type=jnp.float32)
    pca_ref[...] = (jnp.dot(f, wp_ref[...], preferred_element_type=jnp.float32)
                    - bp_ref[...])


def grod_transforms(feat, w_lda, w_pca, b_pca, tn):
    n_pad, d_pad = feat.shape
    f_pad = w_lda.shape[1]

    flops = 2 * n_pad * d_pad * f_pad * 2
    bytes_accessed = 4 * (n_pad * d_pad + 2 * d_pad * f_pad + f_pad
                          + 2 * n_pad * f_pad)

    return pl.pallas_call(
        _transform_kernel,
        out_shape=(jax.ShapeDtypeStruct((n_pad, f_pad), jnp.float32),
                   jax.ShapeDtypeStruct((n_pad, f_pad), jnp.float32)),
        grid=(n_pad // tn,),
        in_specs=[pl.BlockSpec((tn, d_pad), lambda i: (i, 0)),
                  pl.BlockSpec((d_pad, f_pad), lambda i: (0, 0)),
                  pl.BlockSpec((d_pad, f_pad), lambda i: (0, 0)),
                  pl.BlockSpec((1, f_pad), lambda i: (0, 0))],
        out_specs=(pl.BlockSpec((tn, f_pad), lambda i: (i, 0)),
                   pl.BlockSpec((tn, f_pad), lambda i: (i, 0))),
        compiler_params=pltpu.CompilerParams(
            dimension_semantics=("parallel",),
            vmem_limit_bytes=_VMEM_LIMIT),
        cost_estimate=pl.CostEstimate(flops=flops, transcendentals=0,
                                      bytes_accessed=bytes_accessed),
    )(feat, w_lda, w_pca, b_pca)


# --------------------------------------------------------------------------
# GRODNet wrapper (parameters initialized deterministically in-script)
# --------------------------------------------------------------------------
class GRODNetPallas:
    """GRODNet.forward(x, y) -> (feat, X_lda, X_pca) with a synthetic
    avg-pool + fc backbone (backbone.fc is Identity in the reference)."""

    def __init__(self, in_channels, hidden_dim, feat_dim, num_classes, key):
        self.hidden_dim = hidden_dim
        self.feat_dim = feat_dim          # LDA / PCA n_components
        self.n_cls = num_classes

        # lane/sublane-dense padded sizes (128-lane outputs, K >= 8 sublanes)
        self.c_pad = _round_up(in_channels, 8)
        self.d_pad = _round_up(hidden_dim, 128)
        self.k_pad = _round_up(num_classes, 8)
        self.f_pad = _round_up(feat_dim, 128)

        k0, k1, k2, k3 = jax.random.split(key, 4)
        w_fc = 0.5 * jax.random.normal(k0, (in_channels, hidden_dim), jnp.float32)
        b_fc = 0.1 * jax.random.normal(k1, (1, hidden_dim), jnp.float32)
        # padded once here (no per-forward weight construction, no HW replication)
        self.w_fc_pad = _pad2d(w_fc, self.c_pad, self.d_pad)
        self.b_fc_pad = _pad2d(b_fc, 1, self.d_pad)

        # GRODNet heads + k (declared in __init__, unused by forward())
        self.w_head1 = 0.1 * jax.random.normal(k2, (2 * num_classes, hidden_dim),
                                               jnp.float32)
        self.b_head1 = jnp.zeros((2 * num_classes,), jnp.float32)
        self.w_head = 0.1 * jax.random.normal(k3, (num_classes + 1, hidden_dim),
                                              jnp.float32)
        self.b_head = jnp.zeros((num_classes + 1,), jnp.float32)
        self.k = jnp.array([0.1], jnp.float32)

    def forward(self, x, y):
        n, c, h, w = x.shape
        d, k_cls = self.hidden_dim, self.n_cls

        # backbone global average pool: a single XLA reduce over H*W (x is read
        # from HBM exactly once; the fc projection runs inside kernel 1).
        pooled = jnp.mean(x.reshape(n, c, h * w).astype(jnp.float32), axis=2)

        # torch.unique(y): labels are 0..n_cls-1 and every class is present in
        # the batch (a missing class would leave its mean undefined, as in torch).
        onehot = jax.nn.one_hot(y, k_cls, dtype=jnp.float32)          # [N, K]
        counts = jnp.sum(onehot, axis=0)[:, None]                     # [K, 1]

        row_bytes = 4 * (self.c_pad + self.k_pad + 1 + 2 * self.d_pad
                         + 2 * self.f_pad)
        tn, n_par, n_red, n_pad = _plan_rows(n, row_bytes)

        pooled_p = _pad2d(pooled, n_pad, self.c_pad)
        onehot_p = _pad2d(onehot, n_pad, self.k_pad)
        mask_p = _pad2d(jnp.ones((n, 1), jnp.float32), n_pad, 1)

        feat_pad, g_part, s_part = backbone_and_stats(
            pooled_p, self.w_fc_pad, self.b_fc_pad, onehot_p, mask_p,
            tn, n_par, n_red)

        # combine per-core partials + tiny (D x D) scatter algebra in plain JAX.
        # Gram form == the centered torch loops in exact arithmetic (mild f32
        # cancellation risk only for large-mean features).
        g = jnp.sum(g_part, axis=0)[:d, :d]            # feat^T @ feat
        s = jnp.sum(s_part, axis=0)[:k_cls, :d]        # per-class sums  [K, D]
        means = s / counts                             # class means     [K, D]
        osum = jnp.sum(s, axis=0, keepdims=True)       # overall sum     [1, D]
        omean = osum / n                               # overall mean    [1, D]
        p_mat = means.T @ s                            # sum_c n_c mu_c mu_c^T
        nmu = omean.T @ osum                           # n * mu mu^T
        sw = g - p_mat                                 # within-class scatter
        sb = p_mat - nmu                               # between-class scatter
        mprod = sw @ sb
        cov = (g - nmu) / max(n - 1, 1)

        # --- LDA.fit / PCA.fit eigen paths ---
        # TODO(synk): torch.linalg.eigh / torch.inverse / torch.topk have no
        # Pallas equivalent; done in plain JAX.
        m = mprod + 1e-7 * jnp.eye(d, dtype=jnp.float32)
        evals, evecs = jnp.linalg.eigh(jnp.linalg.inv(m),
                                       symmetrize_input=False)  # lower-tri, like torch
        _, top_idx = lax.top_k(evals, self.feat_dim)
        comp_lda = evecs[:, top_idx]                             # [D, F]

        evals_p, evecs_p = jnp.linalg.eigh(cov, symmetrize_input=False)
        _, top_idx_p = lax.top_k(evals_p, self.feat_dim)
        comp_pca = evecs_p[:, top_idx_p]                         # [D, F]

        # merged LDA/PCA transform kernel; components padded to lane-dense
        # [D_pad, F_pad], PCA centering folded into a bias row.
        w_lda_pad = _pad2d(comp_lda, self.d_pad, self.f_pad)
        w_pca_pad = _pad2d(comp_pca, self.d_pad, self.f_pad)
        b_pca_pad = _pad2d(omean @ comp_pca, 1, self.f_pad)

        x_lda_pad, x_pca_pad = grod_transforms(feat_pad, w_lda_pad, w_pca_pad,
                                               b_pca_pad, tn)

        feat = feat_pad[:n, :d]
        return (feat,
                x_lda_pad[:n, :self.feat_dim],
                x_pca_pad[:n, :self.feat_dim])


if __name__ == "__main__":
    N, C, H, W = 8, 4, 16, 16
    hidden_dim, feat_dim, num_classes = 32, 16, 4

    key = jax.random.PRNGKey(0)
    k_x, k_params = jax.random.split(key)
    x = jax.random.normal(k_x, (N, C, H, W), dtype=jnp.float32)
    # labels cover every class (required by LDA per-class means)
    y = jnp.array([0, 1, 2, 3, 0, 1, 2, 3], dtype=jnp.int32)

    net = GRODNetPallas(C, hidden_dim, feat_dim, num_classes, k_params)
    feat, x_lda, x_pca = net.forward(x, y)
    jax.block_until_ready((feat, x_lda, x_pca))

    assert feat.shape == (N, hidden_dim)
    assert x_lda.shape == (N, feat_dim)
    assert x_pca.shape == (N, feat_dim)
    assert bool(jnp.all(jnp.isfinite(feat)))
    print("KERNEL_OK")
</pallas_src>

<mosaic_0001>
module attributes {stable_mosaic.version = 11 : i64} {
  func.func @_stats_kernel(%arg0: i32, %arg1: i32, %arg2: memref<8x8xf32, #tpu.memory_space<vmem>>, %arg3: memref<8x128xf32, #tpu.memory_space<vmem>>, %arg4: memref<1x128xf32, #tpu.memory_space<vmem>>, %arg5: memref<8x8xf32, #tpu.memory_space<vmem>>, %arg6: memref<8x1xf32, #tpu.memory_space<vmem>>, %arg7: memref<8x128xf32, #tpu.memory_space<vmem>>, %arg8: memref<1x128x128xf32, #tpu.memory_space<vmem>>, %arg9: memref<1x8x128xf32, #tpu.memory_space<vmem>>, %arg10: memref<128x128xf32, #tpu.memory_space<vmem>>, %arg11: memref<8x128xf32, #tpu.memory_space<vmem>>) attributes {dimension_semantics = [#tpu.dimension_semantics<parallel>, #tpu.dimension_semantics<arbitrary>], iteration_bounds = array<i64: 1, 1>, scalar_prefetch = 0 : i64, scratch_operands = 2 : i64, tpu.core_type = #tpu.core_type<tc>, window_params = [{transform_indices = @transform_0, window_bounds = array<i64: 8, 8>}, {pipeline_mode = #tpu.pipeline_mode<synchronous>, transform_indices = @transform_1, window_bounds = array<i64: 8, 128>}, {pipeline_mode = #tpu.pipeline_mode<synchronous>, transform_indices = @transform_2, window_bounds = array<i64: 1, 128>}, {transform_indices = @transform_3, window_bounds = array<i64: 8, 8>}, {transform_indices = @transform_4, window_bounds = array<i64: 8, 1>}, {transform_indices = @transform_5, window_bounds = array<i64: 8, 128>}, {transform_indices = @transform_6, window_bounds = array<i64: 1, 128, 128>}, {transform_indices = @transform_7, window_bounds = array<i64: 1, 8, 128>}]} {
    %c0_i32 = arith.constant 0 : i32
    %0 = arith.cmpi eq, %arg1, %c0_i32 : i32
    %1 = arith.extui %0 : i1 to i32
    %c0_i32_0 = arith.constant 0 : i32
    %2 = arith.cmpi ne, %1, %c0_i32_0 : i32
    scf.if %2 {
      %cst_24 = arith.constant 0.000000e+00 : f32
      %25 = vector.broadcast %cst_24 : f32 to vector<128x128xf32>
      %c0_25 = arith.constant 0 : index
      %c0_26 = arith.constant 0 : index
      %26 = vector.load %arg10[%c0_25, %c0_26] : memref<128x128xf32, #tpu.memory_space<vmem>>, vector<128x128xf32>
      tpu.vector_store %arg10[%c0_25, %c0_26], %25 {strides = array<i32>} : memref<128x128xf32, #tpu.memory_space<vmem>>, vector<128x128xf32>,
      %cst_27 = arith.constant 0.000000e+00 : f32
      %27 = vector.broadcast %cst_27 : f32 to vector<8x128xf32>
      %c0_28 = arith.constant 0 : index
      %c0_29 = arith.constant 0 : index
      %28 = vector.load %arg11[%c0_28, %c0_29] : memref<8x128xf32, #tpu.memory_space<vmem>>, vector<8x128xf32>
      tpu.vector_store %arg11[%c0_28, %c0_29], %27 {strides = array<i32>} : memref<8x128xf32, #tpu.memory_space<vmem>>, vector<8x128xf32>,
    } else {
    }
    %c0 = arith.constant 0 : index
    %c0_1 = arith.constant 0 : index
    %3 = vector.load %arg2[%c0, %c0_1] : memref<8x8xf32, #tpu.memory_space<vmem>>, vector<8x8xf32>
    %c0_2 = arith.constant 0 : index
    %c0_3 = arith.constant 0 : index
    %4 = vector.load %arg3[%c0_2, %c0_3] : memref<8x128xf32, #tpu.memory_space<vmem>>, vector<8x128xf32>
    %cst = arith.constant dense<0.000000e+00> : vector<8x128xf32>
    %5 = tpu.matmul %3, %4, %cst {dimension_numbers = #tpu.dot_dimension_numbers<[1], [0], [0], [1], [0, 0, 1, 1], [], []>} : vector<8x8xf32>, vector<8x128xf32>, vector<8x128xf32> -> vector<8x128xf32>
    %c0_4 = arith.constant 0 : index
    %c0_5 = arith.constant 0 : index
    %6 = vector.load %arg4[%c0_4, %c0_5] : memref<1x128xf32, #tpu.memory_space<vmem>>, vector<1x128xf32>
    %7 = vector.broadcast %6 : vector<1x128xf32> to vector<8x128xf32>
    %8 = arith.addf %5, %7 : vector<8x128xf32>
    %c0_6 = arith.constant 0 : index
    %c0_7 = arith.constant 0 : index
    %9 = vector.load %arg7[%c0_6, %c0_7] : memref<8x128xf32, #tpu.memory_space<vmem>>, vector<8x128xf32>
    tpu.vector_store %arg7[%c0_6, %c0_7], %8 {strides = array<i32>} : memref<8x128xf32, #tpu.memory_space<vmem>>, vector<8x128xf32>,
    %c0_8 = arith.constant 0 : index
    %c0_9 = arith.constant 0 : index
    %10 = vector.load %arg6[%c0_8, %c0_9] : memref<8x1xf32, #tpu.memory_space<vmem>>, vector<8x1xf32>
    %11 = vector.broadcast %10 : vector<8x1xf32> to vector<8x128xf32>
    %12 = arith.mulf %8, %11 : vector<8x128xf32>
    %c0_10 = arith.constant 0 : index
    %c0_11 = arith.constant 0 : index
    %13 = vector.load %arg10[%c0_10, %c0_11] : memref<128x128xf32, #tpu.memory_space<vmem>>, vector<128x128xf32>
    %cst_12 = arith.constant dense<0.000000e+00> : vector<128x128xf32>
    %14 = tpu.matmul %12, %12, %cst_12 {dimension_numbers = #tpu.dot_dimension_numbers<[0], [0], [1], [1], [0, 1, 1, 1], [], []>} : vector<8x128xf32>, vector<8x128xf32>, vector<128x128xf32> -> vector<128x128xf32>
    %15 = arith.addf %13, %14 : vector<128x128xf32>
    %c0_13 = arith.constant 0 : index
    %c0_14 = arith.constant 0 : index
    %16 = vector.load %arg10[%c0_13, %c0_14] : memref<128x128xf32, #tpu.memory_space<vmem>>, vector<128x128xf32>
    tpu.vector_store %arg10[%c0_13, %c0_14], %15 {strides = array<i32>} : memref<128x128xf32, #tpu.memory_space<vmem>>, vector<128x128xf32>,
    %c0_15 = arith.constant 0 : index
    %c0_16 = arith.constant 0 : index
    %17 = vector.load %arg11[%c0_15, %c0_16] : memref<8x128xf32, #tpu.memory_space<vmem>>, vector<8x128xf32>
    %c0_17 = arith.constant 0 : index
    %c0_18 = arith.constant 0 : index
    %18 = vector.load %arg5[%c0_17, %c0_18] : memref<8x8xf32, #tpu.memory_space<vmem>>, vector<8x8xf32>
    %cst_19 = arith.constant dense<0.000000e+00> : vector<8x128xf32>
    %19 = tpu.matmul %18, %12, %cst_19 {dimension_numbers = #tpu.dot_dimension_numbers<[0], [0], [1], [1], [0, 1, 1, 1], [], []>} : vector<8x8xf32>, vector<8x128xf32>, vector<8x128xf32> -> vector<8x128xf32>
    %20 = arith.addf %17, %19 : vector<8x128xf32>
    %c0_20 = arith.constant 0 : index
    %c0_21 = arith.constant 0 : index
    %21 = vector.load %arg11[%c0_20, %c0_21] : memref<8x128xf32, #tpu.memory_space<vmem>>, vector<8x128xf32>
    tpu.vector_store %arg11[%c0_20, %c0_21], %20 {strides = array<i32>} : memref<8x128xf32, #tpu.memory_space<vmem>>, vector<8x128xf32>,
    %c0_i32_22 = arith.constant 0 : i32
    %22 = arith.cmpi eq, %arg1, %c0_i32_22 : i32
    %23 = arith.extui %22 : i1 to i32
    %c0_i32_23 = arith.constant 0 : i32
    %24 = arith.cmpi ne, %23, %c0_i32_23 : i32
    scf.if %24 {
      %c0_24 = arith.constant 0 : index
      %c0_25 = arith.constant 0 : index
      %25 = vector.load %arg10[%c0_24, %c0_25] : memref<128x128xf32, #tpu.memory_space<vmem>>, vector<128x128xf32>
      %c0_26 = arith.constant 0 : index
      %c0_27 = arith.constant 0 : index
      %c0_28 = arith.constant 0 : index
      %26 = vector.load %arg8[%c0_26, %c0_27, %c0_28] : memref<1x128x128xf32, #tpu.memory_space<vmem>>, vector<1x128x128xf32>
      %27 = vector.shape_cast %26 : vector<1x128x128xf32> to vector<128x128xf32>
      %28 = vector.shape_cast %25 : vector<128x128xf32> to vector<1x128x128xf32>
      tpu.vector_store %arg8[%c0_26, %c0_27, %c0_28], %28 {strides = array<i32>} : memref<1x128x128xf32, #tpu.memory_space<vmem>>, vector<1x128x128xf32>,
      %c0_29 = arith.constant 0 : index
      %c0_30 = arith.constant 0 : index
      %29 = vector.load %arg11[%c0_29, %c0_30] : memref<8x128xf32, #tpu.memory_space<vmem>>, vector<8x128xf32>
      %c0_31 = arith.constant 0 : index
      %c0_32 = arith.constant 0 : index
      %c0_33 = arith.constant 0 : index
      %30 = vector.load %arg9[%c0_31, %c0_32, %c0_33] : memref<1x8x128xf32, #tpu.memory_space<vmem>>, vector<1x8x128xf32>
      %31 = vector.shape_cast %30 : vector<1x8x128xf32> to vector<8x128xf32>
      %32 = vector.shape_cast %29 : vector<8x128xf32> to vector<1x8x128xf32>
      tpu.vector_store %arg9[%c0_31, %c0_32, %c0_33], %32 {strides = array<i32>} : memref<1x8x128xf32, #tpu.memory_space<vmem>>, vector<1x8x128xf32>,
    } else {
    }
    return
  }
  func.func @transform_0(%arg0: i32, %arg1: i32) -> (i32, i32) {
    %c1_i32 = arith.constant 1 : i32
    %0 = arith.muli %arg0, %c1_i32 : i32
    %1 = arith.addi %0, %arg1 : i32
    %c0_i32 = arith.constant 0 : i32
    %c0_i32_0 = arith.constant 0 : i32
    return %1, %c0_i32 : i32, i32
  }
  func.func @transform_1(%arg0: i32, %arg1: i32) -> (i32, i32) {
    %c0_i32 = arith.constant 0 : i32
    %c0_i32_0 = arith.constant 0 : i32
    %c0_i32_1 = arith.constant 0 : i32
    return %c0_i32, %c0_i32_0 : i32, i32
  }
  func.func @transform_2(%arg0: i32, %arg1: i32) -> (i32, i32) {
    %c0_i32 = arith.constant 0 : i32
    %c0_i32_0 = arith.constant 0 : i32
    %c0_i32_1 = arith.constant 0 : i32
    return %c0_i32, %c0_i32_0 : i32, i32
  }
  func.func @transform_3(%arg0: i32, %arg1: i32) -> (i32, i32) {
    %c1_i32 = arith.constant 1 : i32
    %0 = arith.muli %arg0, %c1_i32 : i32
    %1 = arith.addi %0, %arg1 : i32
    %c0_i32 = arith.constant 0 : i32
    %c0_i32_0 = arith.constant 0 : i32
    return %1, %c0_i32 : i32, i32
  }
  func.func @transform_4(%arg0: i32, %arg1: i32) -> (i32, i32) {
    %c1_i32 = arith.constant 1 : i32
    %0 = arith.muli %arg0, %c1_i32 : i32
    %1 = arith.addi %0, %arg1 : i32
    %c0_i32 = arith.constant 0 : i32
    %c0_i32_0 = arith.constant 0 : i32
    return %1, %c0_i32 : i32, i32
  }
  func.func @transform_5(%arg0: i32, %arg1: i32) -> (i32, i32) {
    %c1_i32 = arith.constant 1 : i32
    %0 = arith.muli %arg0, %c1_i32 : i32
    %1 = arith.addi %0, %arg1 : i32
    %c0_i32 = arith.constant 0 : i32
    %c0_i32_0 = arith.constant 0 : i32
    return %1, %c0_i32 : i32, i32
  }
  func.func @transform_6(%arg0: i32, %arg1: i32) -> (i32, i32, i32) {
    %c0_i32 = arith.constant 0 : i32
    %c0_i32_0 = arith.constant 0 : i32
    %c0_i32_1 = arith.constant 0 : i32
    return %arg0, %c0_i32, %c0_i32_0 : i32, i32, i32
  }
  func.func @transform_7(%arg0: i32, %arg1: i32) -> (i32, i32, i32) {
    %c0_i32 = arith.constant 0 : i32
    %c0_i32_0 = arith.constant 0 : i32
    %c0_i32_1 = arith.constant 0 : i32
    return %arg0, %c0_i32, %c0_i32_0 : i32, i32, i32
  }
}

</mosaic_0001>

<bundles_post_ra>
// kernel: tpu_custom_call.1
= control target key start
LH: loop header
LB: loop body
LE: loop exit
PB: predicated region body
PF: predicated region fallthrough
CT: control target
= control target key end

     0   :  { %13 = vsyncpa [#allocation5], 0  ;;  %s1051_s0 = inlined_call_operand.vmem [shape: f32[8,8], index: 0, kind: input, shape index: {}]   ;;  %s1052_s1 = inlined_call_operand.hbm [shape: f32[8,128], index: 1, kind: input, shape index: {}]   ;;  %s1053_s2 = inlined_call_operand.hbm [shape: f32[1,128], index: 2, kind: input, shape index: {}]   ;;  %s1054_s3 = inlined_call_operand.vmem [shape: f32[8,8], index: 3, kind: input, shape index: {}]   ;;  %s1055_s4 = inlined_call_operand.vmem [shape: f32[8,1], index: 4, kind: input, shape index: {}]   ;;  %s1056_s5 = inlined_call_operand.hbm [shape: f32[8,128], index: 5, kind: output, shape index: {0}]   ;;  %s1057_s6 = inlined_call_operand.hbm [shape: f32[1,128,128], index: 6, kind: output, shape index: {1}]   ;;  %s1058_s7 = inlined_call_operand.hbm [shape: f32[1,8,128], index: 7, kind: output, shape index: {2}]  }
   0x1   :  { %14 = vsyncpa [#allocation8], 0 }
   0x2   :  { %15 = vsyncpa [#allocation6], 0 }
   0x3   :  { %16 = vsyncpa [#allocation11], 0  ;;  %s905_s24 = smov [#allocation4]   ;;  %s906_s26 = smov [#allocation7]  }
   0x4   :  { %s31_s25 = sshll.u32 %s905_s24, 4  ;;  %s41_s27 = sshll.u32 %s906_s26, 4  ;;  %s32_s25 = int_to_ptr.vmem [resolvable:$true] %s31_s25  ;;  %s42_s27 = int_to_ptr.vmem [resolvable:$true] %s41_s27 }
   0x5   :  { %s787_s30 = scalar_lea.hbm %s1052_s1, 128 }
   0x6   :  { %p788_p0 = scmp.ne.s32.totalorder %s1052_s1, %s787_s30  ;;  %p791_p1 = scmp.lt.u32.totalorder %s787_s30, %s1052_s1 }
   0x8   :  { %p793_p2 = pnand %p791_p1, %p788_p0 }
   0xa   :  { %796 = shalt.err (!%p793_p2)
}
   0xb   :  { %s797_s12 = scalar_lea.vmem %s32_s25, 128  ;;  %p802_p4 = scmp.lt.s32.totalorder %s32_s25, %s32_s25 }
   0xc   :  { %p798_p3 = scmp.ne.s32.totalorder %s32_s25, %s797_s12  ;;  %p803_p5 = scmp.lt.s32.totalorder %s797_s12, %s797_s12 }
   0xe   :  { %p804_p6 = por %p803_p5, %p802_p4 }
  0x10   :  { %p805_p7 = pnand %p804_p6, %p798_p3 }
  0x12   :  { %808 = shalt.err (!%p805_p7)
}
  0x13   :  { %34 = dma.hbm_to_vmem [thread:$0]  %s1052_s1, 128, %s32_s25, [#allocation5]  }
  0x14   :  { %s809_s17 = scalar_lea.hbm %s1053_s2, 16 }
  0x15   :  { %p810_p8 = scmp.ne.s32.totalorder %s1053_s2, %s809_s17  ;;  %p813_p9 = scmp.lt.u32.totalorder %s809_s17, %s1053_s2 }
  0x17   :  { %p815_p10 = pnand %p813_p9, %p810_p8 }
  0x19   :  { %818 = shalt.err (!%p815_p10)
}
  0x1a   :  { %s819_s22 = scalar_lea.vmem %s42_s27, 16  ;;  %s823_s23 = scalar_lea.vmem %s42_s27, 32 }
  0x1b   :  { %p820_p11 = scmp.ne.s32.totalorder %s42_s27, %s819_s22  ;;  %p824_p12 = scmp.lt.s32.totalorder %s42_s27, %s42_s27 }
  0x1c   :  { %p825_p13 = scmp.lt.s32.totalorder %s823_s23, %s819_s22 }
  0x1e   :  { %p826_p0 = por %p825_p13, %p824_p12 }
  0x20   :  { %p827_p1 = pnand %p826_p0, %p820_p11 }
  0x22   :  { %830 = shalt.err (!%p827_p1)
}
  0x23   :  { %44 = dma.hbm_to_vmem [thread:$0]  %s1053_s2, 16, %s42_s27, [#allocation8]  }
  0x24   :  { %897 = dma.done.wait [#allocation5], 128  }
  0x25   :  { %898 = vsyncadd [#allocation5], 4294967168 }
  0x26   :  { %899 = dma.done.wait [#allocation8], 16  }
  0x27   :  { %900 = vsyncadd [#allocation8], 4294967280  ;;  %v907_v0 = vmov 0.0   ;;  %vm908_vm0 = vmmov 0   ;;  %v909_v1 = vmov 0   ;;  %vm131_vm1 = vcmask 64512  }
  0x28   :  { %738 = vmatprep.subr.mxu0 %v907_v0  ;;  %740 = vmatprep.mubr.msk.f32.mxu0 %vm908_vm0, %v907_v0  ;;  %v123_v2 = vld [vmem:[#allocation4] sm:$0xff]  ;;  %v698_v6 = vld [vmem:[#allocation7] ss:$0 sm:$0xff] }
  0x29   :  { %786 = vset.pattern.permute.xlu0 %v909_v1  ;;  %v122_v3 = vld [vmem:[%s1051_s0] sm:$0xff]  ;;  %739 = vmatpush3.msra.mxu0 %v123_v2  ;;  %s910_s0 = smov [#allocation9]  }
  0x2a   :  { %v206_v4 = vld [vmem:[%s1055_s4] sm:$0xff]  ;;  %741 = vmatmul.mubr.msk.f32.vlgmr.msra.gmra.mrb[0].mxu0 %vm131_vm1, %v122_v3 }
  0x2b   :  { %209 = vperm.xlu0 %786, %v206_v4   ;;  %v487_v5 = vld [vmem:[%s1054_s3] sm:$0xff]  ;;  %s641_s3 = sshll.u32 %s910_s0, 4  ;;  %s642_s3 = int_to_ptr.vmem [resolvable:$true] %s641_s3 }
  0x2c   :  { %488 = vxpose.xlu1.b32.start.end [1/1] (short) (narrow) %v487_v5, 8  ;;  %s831_s4 = scalar_lea.vmem %s642_s3, 128  ;;  %p836_p3 = scmp.lt.s32.totalorder %s642_s3, %s642_s3 }
  0x2d   :  { %p832_p2 = scmp.ne.s32.totalorder %s642_s3, %s831_s4  ;;  %p837_p4 = scmp.lt.s32.totalorder %s831_s4, %s831_s4 }
  0x2f   :  { %p838_p5 = por %p837_p4, %p836_p3 }
  0x31   :  { %p839_p6 = pnand %p838_p5, %p832_p2 }
  0xaa   :  { %v210_v8 = vpop.permute.xlu0 %209 }
  0xac   :  { %v504_v18 = vpop.trf.xlu1 }
  0xfd   :  { %v201_v7 = vpop.f32.mrb[0].mxu0 }
  0xfe   :  { %v202_v9 = vadd.f32 %v698_v6, %v201_v7  ;;  %v742_v10 = vpop.f32.mrb[1].mxu0 }
 0x100   :  { %205 = vst [vmem:[#allocation9] sm:$0xff] %v202_v9  ;;  %v212_v11 = vmul.f32 %v210_v8, %v202_v9 }
 0x102   :  { %229 = vxpose.xlu0.b32.start.end [1/1] (short) %v212_v11, 128  ;;  %743 = vmatprep.subr.mxu0 %v212_v11 }
 0x103   :  { %774 = vmatprep.subr.mxu1 %v212_v11  ;;  %744 = vmatpush3.msra.mxu0 %v212_v11 }
 0x104   :  { %775 = vmatpush3.msra.mxu1 %v212_v11  ;;  %769 = vmatprep.subr.mxu0 %v907_v0 }
 0x182   :  { %v245_v12 = vpop.trf.xlu0 }
 0x183   :  { %745 = vmatprep.mubr.msk.f32.mxu0 %vm131_vm1, %v245_v12 }
 0x186   :  { %v246_v13 = vpop.trf.xlu0 }
 0x187   :  { %746 = vmatmul.mubr.msk.f32.vlgmr.msra.gmra.mrb[2].mxu0 %vm131_vm1, %v246_v13 }
 0x188   :  { %770 = vmatpush3.msra.mxu0 %v212_v11 }
 0x18a   :  { %v247_v14 = vpop.trf.xlu0 }
 0x18b   :  { %748 = vmatprep.mubr.msk.f32.mxu0 %vm131_vm1, %v247_v14 }
 0x18e   :  { %v248_v15 = vpop.trf.xlu0 }
 0x18f   :  { %749 = vmatmul.mubr.msk.f32.gmra.mrb[4].mxu0 %vm131_vm1, %v248_v15 }
 0x192   :  { %v249_v16 = vpop.trf.xlu0 }
 0x193   :  { %751 = vmatprep.mubr.msk.f32.mxu0 %vm131_vm1, %v249_v16 }
 0x196   :  { %v250_v17 = vpop.trf.xlu0 }
 0x197   :  { %752 = vmatmul.mubr.msk.f32.gmra.mrb[6].mxu0 %vm131_vm1, %v250_v17 }
 0x198   :  { %771 = vmatprep.mubr.msk.f32.mxu0 %vm908_vm0, %v907_v0 }
 0x19a   :  { %v251_v19 = vpop.trf.xlu0 }
 0x19b   :  { %754 = vmatprep.mubr.msk.f32.mxu1 %vm131_vm1, %v251_v19  ;;  %772 = vmatmul.mubr.msk.f32.vlgmr.msra.gmra.mrb[8].mxu0 %vm131_vm1, %v504_v18 }
 0x19e   :  { %v252_v20 = vpop.trf.xlu0 }
 0x19f   :  { %755 = vmatmul.mubr.msk.f32.vlgmr.msra.gmra.mrb[0].mxu1 %vm131_vm1, %v252_v20 }
 0x1a2   :  { %v253_v21 = vpop.trf.xlu0 }
 0x1a3   :  { %757 = vmatprep.mubr.msk.f32.mxu1 %vm131_vm1, %v253_v21 }
 0x1a6   :  { %v254_v22 = vpop.trf.xlu0 }
 0x1a7   :  { %758 = vmatmul.mubr.msk.f32.gmra.mrb[2].mxu1 %vm131_vm1, %v254_v22 }
 0x1aa   :  { %v255_v23 = vpop.trf.xlu0 }
 0x1ab   :  { %760 = vmatprep.mubr.msk.f32.mxu1 %vm131_vm1, %v255_v23 }
 0x1ae   :  { %v256_v24 = vpop.trf.xlu0 }
 0x1af   :  { %761 = vmatmul.mubr.msk.f32.gmra.mrb[4].mxu1 %vm131_vm1, %v256_v24 }
 0x1b2   :  { %v257_v25 = vpop.trf.xlu0 }
 0x1b3   :  { %763 = vmatprep.mubr.msk.f32.mxu1 %vm131_vm1, %v257_v25 }
 0x1b6   :  { %v258_v26 = vpop.trf.xlu0 }
 0x1b7   :  { %764 = vmatmul.mubr.msk.f32.gmra.mrb[6].mxu1 %vm131_vm1, %v258_v26 }
 0x1ba   :  { %v259_v27 = vpop.trf.xlu0 }
 0x1bb   :  { %766 = vmatprep.mubr.msk.f32.mxu1 %vm131_vm1, %v259_v27 }
 0x1be   :  { %v260_v28 = vpop.trf.xlu0 }
 0x1bf   :  { %767 = vmatmul.mubr.msk.f32.gmra.mrb[8].mxu1 %vm131_vm1, %v260_v28 }
 0x1c0   :  { %842 = shalt.err (!%p839_p6)
}
 0x1c1   :  { %s843_s9 = scalar_lea.hbm %s1056_s5, 128 }
 0x1c2   :  { %p844_p7 = scmp.ne.s32.totalorder %s1056_s5, %s843_s9  ;;  %p847_p8 = scmp.lt.u32.totalorder %s843_s9, %s1056_s5 }
 0x1c4   :  { %p849_p9 = pnand %p847_p8, %p844_p7 }
 0x1c6   :  { %852 = shalt.err (!%p849_p9)
}
 0x1c7   :  { %644 = dma.vmem_to_hbm [thread:$0]  %s642_s3, 128, %s1056_s5, [#allocation6]  }
 0x1c8   :  { %s911_s5 = smov [#allocation10]   ;;  %s912_s17 = smov [#allocation12]  }
 0x1c9   :  { %s650_s16 = sshll.u32 %s911_s5, 4  ;;  %s663_s18 = sshll.u32 %s912_s17, 4  ;;  %s651_s16 = int_to_ptr.vmem [resolvable:$true] %s650_s16  ;;  %s1020_s18 = int_to_ptr.vmem [resolvable:$true] %s663_s18 }
 0x1ca   :  { %s853_s19 = scalar_lea.vmem %s651_s16, 2048  ;;  %p858_p11 = scmp.lt.s32.totalorder %s651_s16, %s651_s16 }
 0x1cb   :  { %p854_p10 = scmp.ne.s32.totalorder %s651_s16, %s853_s19  ;;  %p859_p12 = scmp.lt.s32.totalorder %s853_s19, %s853_s19 }
 0x1cd   :  { %p860_p13 = por %p859_p12, %p858_p11 }
 0x1cf   :  { %p861_p0 = pnand %p860_p13, %p854_p10 }
 0x25a   :  { %v747_v29 = vpop.f32.mrb[2].mxu0 }
 0x25b   :  { %615 = vst [vmem:[#allocation10 + $0x8] sm:$0xff] %v747_v29  ;;  %v375_v30 = vpop.f32.mrb[3].mxu0 }
 0x25c   :  { %614 = vst [vmem:[#allocation10] sm:$0xff] %v375_v30 }
 0x262   :  { %v750_v31 = vpop.f32.mrb[4].mxu0 }
 0x263   :  { %617 = vst [vmem:[#allocation10 + $0x18] sm:$0xff] %v750_v31  ;;  %v385_v32 = vpop.f32.mrb[5].mxu0 }
 0x264   :  { %616 = vst [vmem:[#allocation10 + $0x10] sm:$0xff] %v385_v32 }
 0x26a   :  { %v753_v33 = vpop.f32.mrb[6].mxu0 }
 0x26b   :  { %619 = vst [vmem:[#allocation10 + $0x28] sm:$0xff] %v753_v33  ;;  %v395_v34 = vpop.f32.mrb[7].mxu0 }
 0x26c   :  { %618 = vst [vmem:[#allocation10 + $0x20] sm:$0xff] %v395_v34 }
 0x26e   :  { %v589_v35 = vpop.f32.mrb[8].mxu0 }
 0x26f   :  { %631 = vst [vmem:[#allocation12] sm:$0xff] %v589_v35  ;;  %v773_v36 = vpop.f32.mrb[9].mxu0 }
 0x272   :  { %v756_v37 = vpop.f32.mrb[0].mxu1 }
 0x273   :  { %621 = vst [vmem:[#allocation10 + $0x38] sm:$0xff] %v756_v37  ;;  %v405_v38 = vpop.f32.mrb[1].mxu1 }
 0x274   :  { %620 = vst [vmem:[#allocation10 + $0x30] sm:$0xff] %v405_v38 }
 0x27a   :  { %v759_v39 = vpop.f32.mrb[2].mxu1 }
 0x27b   :  { %623 = vst [vmem:[#allocation10 + $0x48] sm:$0xff] %v759_v39  ;;  %v415_v40 = vpop.f32.mrb[3].mxu1 }
 0x27c   :  { %622 = vst [vmem:[#allocation10 + $0x40] sm:$0xff] %v415_v40 }
 0x282   :  { %v762_v41 = vpop.f32.mrb[4].mxu1 }
 0x283   :  { %625 = vst [vmem:[#allocation10 + $0x58] sm:$0xff] %v762_v41  ;;  %v425_v42 = vpop.f32.mrb[5].mxu1 }
 0x284   :  { %624 = vst [vmem:[#allocation10 + $0x50] sm:$0xff] %v425_v42 }
 0x28a   :  { %v765_v43 = vpop.f32.mrb[6].mxu1 }
 0x28b   :  { %627 = vst [vmem:[#allocation10 + $0x68] sm:$0xff] %v765_v43  ;;  %v435_v44 = vpop.f32.mrb[7].mxu1 }
 0x28c   :  { %626 = vst [vmem:[#allocation10 + $0x60] sm:$0xff] %v435_v44 }
 0x292   :  { %v768_v45 = vpop.f32.mrb[8].mxu1 }
 0x293   :  { %629 = vst [vmem:[#allocation10 + $0x78] sm:$0xff] %v768_v45  ;;  %v445_v46 = vpop.f32.mrb[9].mxu1 }
 0x294   :  { %628 = vst [vmem:[#allocation10 + $0x70] sm:$0xff] %v445_v46 }
 0x295   :  { %864 = shalt.err (!%p861_p0)
}
 0x296   :  { %s865_s22 = scalar_lea.hbm %s1057_s6, 2048 }
 0x297   :  { %p866_p1 = scmp.ne.s32.totalorder %s1057_s6, %s865_s22  ;;  %p869_p2 = scmp.lt.u32.totalorder %s865_s22, %s1057_s6 }
 0x299   :  { %p871_p3 = pnand %p869_p2, %p866_p1 }
 0x29b   :  { %874 = shalt.err (!%p871_p3)
}
 0x29c   :  { %s913_s26 = smov 128   ;;  %s914_s28 = smov 8  }
 0x29d   :  { %656 = dma.vmem_to_hbm [thread:$0]  %s651_s16, 2048, %s1057_s6, [#allocation11], %s913_s26, %s913_s26, %s914_s28  }
 0x29e   :  { %s875_s27 = scalar_lea.vmem %s1020_s18, 128  ;;  %p880_p5 = scmp.lt.s32.totalorder %s1020_s18, %s1020_s18 }
 0x29f   :  { %p876_p4 = scmp.ne.s32.totalorder %s1020_s18, %s875_s27  ;;  %p881_p6 = scmp.lt.s32.totalorder %s875_s27, %s875_s27 }
 0x2a1   :  { %p882_p7 = por %p881_p6, %p880_p5 }
 0x2a3   :  { %p883_p8 = pnand %p882_p7, %p876_p4 }
 0x2a5   :  { %886 = shalt.err (!%p883_p8)
}
 0x2a6   :  { %s887_s4 = scalar_lea.hbm %s1058_s7, 128 }
 0x2a7   :  { %p888_p9 = scmp.ne.s32.totalorder %s1058_s7, %s887_s4  ;;  %p891_p10 = scmp.lt.u32.totalorder %s887_s4, %s1058_s7 }
 0x2a9   :  { %p893_p11 = pnand %p891_p10, %p888_p9 }
 0x2ab   :  { %896 = shalt.err (!%p893_p11)
}
 0x2ac   :  { %666 = dma.vmem_to_hbm [thread:$0]  %s1020_s18, 128, %s1058_s7, [#allocation11]  }
 0x2ad   :  { %901 = dma.done.wait [#allocation6], 128  }
 0x2ae   :  { %902 = vsyncadd [#allocation6], 4294967168 }
 0x2af   :  { %903 = dma.done.wait [#allocation11], 2176  }
 0x2b0   :  { %904 = vsyncadd [#allocation11], 4294965120 }
 0x2b1   :  { %676 = vsyncpa [#allocation5], 1 }
 0x2b2   :  { %677 = vsyncpa [#allocation8], 1 }
 0x2b3   :  { %678 = vsyncpa [#allocation6], 1 }
 0x2b4   :  { %679 = vsyncpa [#allocation11], 1 }

</bundles_post_ra>
